<compile_context>
chip_gen: v5e
topology: v5e:2x2
jax: 0.10.0
libtpu: 0.0.40
codegen_flags: <defaults>
</compile_context>

<pallas_src>
import functools

import jax
import jax.numpy as jnp
import numpy as np
from jax import lax
from jax.experimental import pallas as pl
from jax.experimental.pallas import tpu as pltpu


# ---------------------------------------------------------------------------
# VMEM budget / tile helpers
# ---------------------------------------------------------------------------
def _round_up(n, m):
    return ((n + m - 1) // m) * m


@functools.lru_cache(maxsize=None)
def _vmem_budget_bytes():
    """Generation-aware VMEM budget, leaving ~25% headroom for compiler
    scratch / pipeline buffers.  Falls back to a v7x-safe 64 MiB cap if the
    hardware query is unavailable."""
    cap = 64 * 1024 * 1024
    try:
        v = getattr(pltpu.get_tpu_info(), "vmem_capacity_bytes", None)
        if isinstance(v, (int, np.integer)) and int(v) > 0:
            cap = int(v)
    except Exception:
        pass
    return cap * 3 // 4


def _pick_tile(dim, target, multiple):
    """Largest tile <= target that divides `dim` and is a multiple of
    `multiple`; falls back to the full extent (always (8,128)-legal)."""
    if dim <= target:
        return dim
    t = (target // multiple) * multiple
    while t >= multiple:
        if dim % t == 0:
            return t
        t -= multiple
    # TODO(synk): awkward feature dims (no 128-aligned divisor) fall back to a
    # full-extent block; pad D / F to a multiple of 128 upstream if this ever
    # exceeds the VMEM budget.
    return dim


def _row_tile_and_pad(n_rows, target=1024):
    """Row (sample) tile + padded row count.  bf16 packs 16 rows per sublane
    vreg, so row tiles are multiples of 128 (or 16 for tiny inputs)."""
    mult = 128 if n_rows >= 128 else 16
    n_pad = _round_up(n_rows, mult)
    return _pick_tile(n_pad, target, mult), n_pad


def _pick_xtx_tile_d(d, g, tn, budget):
    """Largest 128-aligned divisor of d such that the (G, td, td) f32 prev/out
    accumulator blocks (double-buffered) plus the two bf16 X blocks and the
    saliency block fit the VMEM budget."""
    for target in (1024, 768, 512, 384, 256, 128):
        cand = _pick_tile(d, target, 128)
        acc_bytes = 2 * 2 * g * cand * cand * 4   # prev + out, double-buffered
        x_bytes = 2 * 2 * tn * cand * 2           # two bf16 X blocks, dbl-buf
        s_bytes = 2 * tn * g * 2
        if acc_bytes + x_bytes + s_bytes <= budget:
            return cand
    return _pick_tile(d, 128, 128)


# ---------------------------------------------------------------------------
# Kernel 1: saliency-weighted Gram-matrix accumulation
#   XTX[g, i, j] += sum_n X[n, i] * X[n, j] * S[n, g]
# grid = (T, N/tn) where T enumerates upper-triangular (i, j) tile pairs
# (j >= i) via scalar-prefetched index arrays; n is innermost ("arbitrary").
# The (G, td, td) f32 output block stays VMEM-resident across n and is used
# directly as the accumulator, seeded from the previous XTX at n == 0.
# ---------------------------------------------------------------------------
def _xtx_kernel(i_idx_ref, j_idx_ref, x_i_ref, x_j_ref, s_ref,
                xtx_prev_ref, xtx_out_ref):
    n = pl.program_id(1)

    @pl.when(n == 0)
    def _():
        xtx_out_ref[...] = xtx_prev_ref[...]        # seed from previous XTX

    xi = x_i_ref[...]                               # (tn, td) bf16
    xj = x_j_ref[...]                               # (tn, td) bf16
    s = s_ref[...]                                  # (tn, G)  bf16
    num_groups = s_ref.shape[1]
    for g in range(num_groups):                     # G folded into the body
        xw = xj * s[:, g:g + 1]                     # bf16 saliency weighting
        # Contract over the sample axis (dim 0 of both operands): no in-kernel
        # x.T relayout -- the MXU takes the transposed-LHS form directly.
        blk = lax.dot_general(xi, xw, (((0,), (0,)), ((), ())),
                              preferred_element_type=jnp.float32)  # (td, td)
        xtx_out_ref[g, :, :] += blk


def accumulate_xtx(x_pad, s_pad, xtx_prev_gdd, *, tile_n):
    """x_pad: (Npad, D) bf16, s_pad: (Npad, G) bf16, xtx_prev_gdd: (G, D, D)
    f32 with only the upper-triangular tiles meaningful."""
    n_pad, d = x_pad.shape
    g = s_pad.shape[-1]
    budget = _vmem_budget_bytes()
    td = _pick_xtx_tile_d(d, g, tile_n, budget)
    nt = d // td

    # Triangular tile schedule (j >= i): XTX is symmetric, so only the upper
    # triangle is computed; export_xtx mirrors once.  For nt >= 2 this axis
    # has >= 3 tiles, keeping both v7x TensorCores busy.
    pairs = [(i, j) for i in range(nt) for j in range(i, nt)]
    i_idx = jnp.asarray([p[0] for p in pairs], jnp.int32)
    j_idx = jnp.asarray([p[1] for p in pairs], jnp.int32)

    grid = (len(pairs), n_pad // tile_n)            # reduction axis (n) last
    # NOTE: double-buffering of the (G, td, td) accumulator blocks is already
    # accounted for in _pick_xtx_tile_d's budget, so no pipeline_mode override.
    return pl.pallas_call(
        _xtx_kernel,
        out_shape=jax.ShapeDtypeStruct((g, d, d), jnp.float32),
        grid_spec=pltpu.PrefetchScalarGridSpec(
            num_scalar_prefetch=2,
            grid=grid,
            in_specs=[
                pl.BlockSpec((tile_n, td), lambda t, n, si, sj: (n, si[t])),
                pl.BlockSpec((tile_n, td), lambda t, n, si, sj: (n, sj[t])),
                pl.BlockSpec((tile_n, g), lambda t, n, si, sj: (n, 0)),
                pl.BlockSpec((g, td, td),
                             lambda t, n, si, sj: (0, si[t], sj[t])),
            ],
            out_specs=pl.BlockSpec((g, td, td),
                                   lambda t, n, si, sj: (0, si[t], sj[t])),
        ),
        compiler_params=pltpu.CompilerParams(
            dimension_semantics=("parallel", "arbitrary"),
            vmem_limit_bytes=budget),
    )(i_idx, j_idx, x_pad, x_pad, s_pad, xtx_prev_gdd)


# ---------------------------------------------------------------------------
# Kernel 2: wrapped real_layer forward (nn.Linear): y = X @ W^T + b
# Tiled matmul with pre-transposed weight (D, F); the f32 output block is the
# accumulator (block index independent of k), bias added at the last k step.
# ---------------------------------------------------------------------------
def _linear_kernel(x_ref, wt_ref, b_ref, o_ref):
    k = pl.program_id(2)

    @pl.when(k == 0)
    def _():
        o_ref[...] = jnp.zeros_like(o_ref)

    o_ref[...] += jnp.dot(x_ref[...], wt_ref[...],
                          preferred_element_type=jnp.float32)

    @pl.when(k == pl.num_programs(2) - 1)
    def _():
        o_ref[...] += b_ref[...]


def linear_forward(x_pad, w_t, b2d, *, tile_m=512, tile_f=512, tile_k=1024):
    """x_pad: (Npad, D) bf16, w_t: (D, F) bf16 (pre-transposed), b2d: (1, F)."""
    n_pad, d = x_pad.shape
    f = w_t.shape[1]
    row_mult = 128 if n_pad % 128 == 0 else 16
    tm = _pick_tile(n_pad, tile_m, row_mult)
    tf = _pick_tile(f, tile_f, 128)
    tk = _pick_tile(d, tile_k, 128)
    grid = (n_pad // tm, f // tf, d // tk)
    return pl.pallas_call(
        _linear_kernel,
        out_shape=jax.ShapeDtypeStruct((n_pad, f), jnp.float32),
        grid=grid,
        in_specs=[
            pl.BlockSpec((tm, tk), lambda m, ff, k: (m, k)),
            pl.BlockSpec((tk, tf), lambda m, ff, k: (k, ff)),
            pl.BlockSpec((1, tf), lambda m, ff, k: (0, ff)),
        ],
        out_specs=pl.BlockSpec((tm, tf), lambda m, ff, k: (m, ff)),
        compiler_params=pltpu.CompilerParams(
            dimension_semantics=("parallel", "parallel", "arbitrary"),
            vmem_limit_bytes=_vmem_budget_bytes()),
    )(x_pad, w_t, b2d)


# ---------------------------------------------------------------------------
# One jitted step: XTX accumulation + linear forward (shared padded X stream).
# ---------------------------------------------------------------------------
@functools.partial(jax.jit, donate_argnums=(0,))
def _saliency_step(xtx_prev_gdd, x_flat_f32, s_flat_f32, w_t_bf16, b_f32):
    n = x_flat_f32.shape[0]
    tn, n_pad = _row_tile_and_pad(n)
    x_bf = x_flat_f32.astype(jnp.bfloat16)
    # TODO(synk): saliency weights are bf16-rounded inside the kernel (perf);
    # keep them f32 if saliency dynamic range demands it.
    s_bf = s_flat_f32.astype(jnp.bfloat16)
    if n_pad != n:
        x_bf = jnp.pad(x_bf, ((0, n_pad - n), (0, 0)))
        s_bf = jnp.pad(s_bf, ((0, n_pad - n), (0, 0)))
    xtx_new = accumulate_xtx(x_bf, s_bf, xtx_prev_gdd, tile_n=tn)
    y = linear_forward(x_bf, w_t_bf16, b_f32)
    return xtx_new, y[:n]


# ---------------------------------------------------------------------------
# Python-side analogue of _LayerWrapperThatAccumulatesSaliency + SaliencyEngine
# ---------------------------------------------------------------------------
class SaliencyWrapper:
    def __init__(self, in_features, out_features, saliency, key):
        self.in_features = in_features
        self.num_groups = saliency.shape[-1]
        self.nsamples = saliency.shape[0]
        self.index = 0
        self.saliencies = saliency.astype(jnp.float32)            # (Ntot, L, G)
        # Persistent accumulator, group-major (G, D, D); only the upper
        # triangle (j >= i) is maintained by the kernel.
        self.XTX = jnp.zeros((self.num_groups, in_features, in_features),
                             jnp.float32)
        # Deterministic "real_layer" (nn.Linear) parameters.
        kw, kb = jax.random.split(key)
        bound = 1.0 / np.sqrt(in_features)
        self.W = jax.random.uniform(kw, (out_features, in_features),
                                    jnp.float32, -bound, bound)
        self.b = jax.random.uniform(kb, (1, out_features),
                                    jnp.float32, -bound, bound)
        # Pre-transpose (and pre-cast) the weight once: (D, F) bf16.
        self.W_t_bf16 = jnp.asarray(self.W.T, jnp.bfloat16)

    def __call__(self, x):
        # engine.add_batch(input)
        bsz = x.shape[0]
        if self.index + bsz > self.nsamples:
            raise ValueError(
                f"saliency buffer exhausted: index {self.index} + batch {bsz}"
                f" > nsamples {self.nsamples}")
        sal_batch = self.saliencies[self.index:self.index + bsz]  # (bsz, L, G)
        self.index += bsz
        B, L, D = x.shape
        X = x.reshape(-1, D).astype(jnp.float32)                  # (N, D)
        S = sal_batch.reshape(-1, sal_batch.shape[-1])            # (N, G)
        # TODO(synk): torch.isnan() ValueError guard not replicated (it would
        # force a host sync every batch); add a host-side check if required.
        self.XTX, y = _saliency_step(self.XTX, X, S, self.W_t_bf16, self.b)
        # wrapped_layer(input) result
        return y.reshape(B, L, -1)

    def export_xtx(self):
        """Mirror the upper-triangular tiles and convert to PyTorch's
        (D, D, G) layout (one-time cost at export)."""
        d = self.in_features
        ii = jnp.arange(d)[:, None]
        jj = jnp.arange(d)[None, :]
        full = jnp.where((jj >= ii)[None], self.XTX,
                         jnp.transpose(self.XTX, (0, 2, 1)))
        return jnp.transpose(full, (1, 2, 0))


if __name__ == "__main__":
    B, L, D, G, F = 2, 8, 32, 4, 32
    nsamples = 4          # two batches of size 2 exercise the accumulation

    key = jax.random.PRNGKey(0)
    kx1, kx2, ks, kp = jax.random.split(key, 4)
    x1 = jax.random.normal(kx1, (B, L, D), jnp.float32)
    x2 = jax.random.normal(kx2, (B, L, D), jnp.float32)
    saliency = jax.random.uniform(ks, (nsamples, L, G), jnp.float32)

    wrapper = SaliencyWrapper(D, F, saliency, kp)
    y1 = wrapper(x1)
    y2 = wrapper(x2)
    y2 = jax.block_until_ready(y2)
    xtx = jax.block_until_ready(wrapper.export_xtx())

    # Reference (plain jnp).  Inputs are bf16-quantized exactly as the kernels
    # quantize them, so tolerances stay tight despite bf16 MXU / VPU feeds.
    def ref_step(x, sal, xtx_acc):
        Xb = x.reshape(-1, D).astype(jnp.bfloat16)
        Sb = sal.reshape(-1, G).astype(jnp.bfloat16)
        XW = Xb[:, :, None] * Sb[:, None, :]                       # bf16
        blk = jnp.einsum('ni,njg->ijg', Xb.astype(jnp.float32),
                         XW.astype(jnp.float32))
        xtx_acc = xtx_acc + blk
        y = (Xb.astype(jnp.float32)
             @ wrapper.W_t_bf16.astype(jnp.float32) + wrapper.b)
        return xtx_acc, y.reshape(B, L, F)

    xtx_ref = jnp.zeros((D, D, G), jnp.float32)
    xtx_ref, y1_ref = ref_step(x1, saliency[0:2], xtx_ref)
    xtx_ref, y2_ref = ref_step(x2, saliency[2:4], xtx_ref)

    assert y1.shape == (B, L, F) and y2.shape == (B, L, F)
    assert xtx.shape == (D, D, G)
    assert np.allclose(np.asarray(y1), np.asarray(y1_ref), rtol=2e-2, atol=2e-2)
    assert np.allclose(np.asarray(y2), np.asarray(y2_ref), rtol=2e-2, atol=2e-2)
    assert np.allclose(np.asarray(xtx), np.asarray(xtx_ref), rtol=2e-2, atol=2e-2)

    print("KERNEL_OK")
</pallas_src>

<mosaic_0001>
module attributes {stable_mosaic.version = 11 : i64} {
  func.func @_xtx_kernel(%arg0: i32, %arg1: i32, %arg2: memref<1xi32, #tpu.memory_space<smem>>, %arg3: memref<1xi32, #tpu.memory_space<smem>>, %arg4: memref<16x32xbf16, #tpu.memory_space<vmem>>, %arg5: memref<16x32xbf16, #tpu.memory_space<vmem>>, %arg6: memref<16x4xbf16, #tpu.memory_space<vmem>>, %arg7: memref<4x32x32xf32, #tpu.memory_space<vmem>>, %arg8: memref<4x32x32xf32, #tpu.memory_space<vmem>>) attributes {dimension_semantics = [#tpu.dimension_semantics<parallel>, #tpu.dimension_semantics<arbitrary>], iteration_bounds = array<i64: 1, 1>, scalar_prefetch = 2 : i64, scratch_operands = 0 : i64, tpu.core_type = #tpu.core_type<tc>, window_params = [{transform_indices = @transform_0, window_bounds = array<i64: 16, 32>}, {transform_indices = @transform_1, window_bounds = array<i64: 16, 32>}, {transform_indices = @transform_2, window_bounds = array<i64: 16, 4>}, {transform_indices = @transform_3, window_bounds = array<i64: 4, 32, 32>}, {transform_indices = @transform_4, window_bounds = array<i64: 4, 32, 32>}]} {
    %c0_i32 = arith.constant 0 : i32
    %0 = arith.cmpi eq, %arg1, %c0_i32 : i32
    %1 = arith.extui %0 : i1 to i32
    %c0_i32_0 = arith.constant 0 : i32
    %2 = arith.cmpi ne, %1, %c0_i32_0 : i32
    scf.if %2 {
      %c0_30 = arith.constant 0 : index
      %c0_31 = arith.constant 0 : index
      %c0_32 = arith.constant 0 : index
      %46 = vector.load %arg7[%c0_30, %c0_31, %c0_32] : memref<4x32x32xf32, #tpu.memory_space<vmem>>, vector<4x32x32xf32>
      %c0_33 = arith.constant 0 : index
      %c0_34 = arith.constant 0 : index
      %c0_35 = arith.constant 0 : index
      %47 = vector.load %arg8[%c0_33, %c0_34, %c0_35] : memref<4x32x32xf32, #tpu.memory_space<vmem>>, vector<4x32x32xf32>
      tpu.vector_store %arg8[%c0_33, %c0_34, %c0_35], %46 {strides = array<i32>} : memref<4x32x32xf32, #tpu.memory_space<vmem>>, vector<4x32x32xf32>,
    } else {
    }
    %c0 = arith.constant 0 : index
    %c0_1 = arith.constant 0 : index
    %3 = vector.load %arg4[%c0, %c0_1] : memref<16x32xbf16, #tpu.memory_space<vmem>>, vector<16x32xbf16>
    %c0_2 = arith.constant 0 : index
    %c0_3 = arith.constant 0 : index
    %4 = vector.load %arg5[%c0_2, %c0_3] : memref<16x32xbf16, #tpu.memory_space<vmem>>, vector<16x32xbf16>
    %c0_4 = arith.constant 0 : index
    %c0_5 = arith.constant 0 : index
    %5 = vector.load %arg6[%c0_4, %c0_5] : memref<16x4xbf16, #tpu.memory_space<vmem>>, vector<16x4xbf16>
    %6 = vector.extract_strided_slice %5 {offsets = [0, 0], sizes = [16, 1], strides = [1, 1]} : vector<16x4xbf16> to vector<16x1xbf16>
    %7 = vector.broadcast %6 : vector<16x1xbf16> to vector<16x32xbf16>
    %8 = arith.mulf %4, %7 : vector<16x32xbf16>
    %cst = arith.constant dense<0.000000e+00> : vector<32x32xf32>
    %9 = tpu.matmul %3, %8, %cst {dimension_numbers = #tpu.dot_dimension_numbers<[0], [0], [1], [1], [0, 1, 1, 1], [], []>} : vector<16x32xbf16>, vector<16x32xbf16>, vector<32x32xf32> -> vector<32x32xf32>
    %c0_6 = arith.constant 0 : index
    %c0_7 = arith.constant 0 : index
    %c0_8 = arith.constant 0 : index
    %10 = vector.load %arg8[%c0_6, %c0_7, %c0_8] : memref<4x32x32xf32, #tpu.memory_space<vmem>>, vector<1x32x32xf32>
    %11 = vector.shape_cast %10 : vector<1x32x32xf32> to vector<32x32xf32>
    %12 = arith.addf %11, %9 : vector<32x32xf32>
    %c0_9 = arith.constant 0 : index
    %c0_10 = arith.constant 0 : index
    %c0_11 = arith.constant 0 : index
    %13 = vector.load %arg8[%c0_9, %c0_10, %c0_11] : memref<4x32x32xf32, #tpu.memory_space<vmem>>, vector<1x32x32xf32>
    %14 = vector.shape_cast %13 : vector<1x32x32xf32> to vector<32x32xf32>
    %15 = vector.shape_cast %12 : vector<32x32xf32> to vector<1x32x32xf32>
    tpu.vector_store %arg8[%c0_9, %c0_10, %c0_11], %15 {strides = array<i32>} : memref<4x32x32xf32, #tpu.memory_space<vmem>>, vector<1x32x32xf32>,
    %16 = vector.extract_strided_slice %5 {offsets = [0, 1], sizes = [16, 1], strides = [1, 1]} : vector<16x4xbf16> to vector<16x1xbf16>
    %17 = vector.broadcast %16 : vector<16x1xbf16> to vector<16x32xbf16>
    %18 = arith.mulf %4, %17 : vector<16x32xbf16>
    %cst_12 = arith.constant dense<0.000000e+00> : vector<32x32xf32>
    %19 = tpu.matmul %3, %18, %cst_12 {dimension_numbers = #tpu.dot_dimension_numbers<[0], [0], [1], [1], [0, 1, 1, 1], [], []>} : vector<16x32xbf16>, vector<16x32xbf16>, vector<32x32xf32> -> vector<32x32xf32>
    %c1 = arith.constant 1 : index
    %c0_13 = arith.constant 0 : index
    %c0_14 = arith.constant 0 : index
    %20 = vector.load %arg8[%c1, %c0_13, %c0_14] : memref<4x32x32xf32, #tpu.memory_space<vmem>>, vector<1x32x32xf32>
    %21 = vector.shape_cast %20 : vector<1x32x32xf32> to vector<32x32xf32>
    %22 = arith.addf %21, %19 : vector<32x32xf32>
    %c1_15 = arith.constant 1 : index
    %c0_16 = arith.constant 0 : index
    %c0_17 = arith.constant 0 : index
    %23 = vector.load %arg8[%c1_15, %c0_16, %c0_17] : memref<4x32x32xf32, #tpu.memory_space<vmem>>, vector<1x32x32xf32>
    %24 = vector.shape_cast %23 : vector<1x32x32xf32> to vector<32x32xf32>
    %25 = vector.shape_cast %22 : vector<32x32xf32> to vector<1x32x32xf32>
    tpu.vector_store %arg8[%c1_15, %c0_16, %c0_17], %25 {strides = array<i32>} : memref<4x32x32xf32, #tpu.memory_space<vmem>>, vector<1x32x32xf32>,
    %26 = vector.extract_strided_slice %5 {offsets = [0, 2], sizes = [16, 1], strides = [1, 1]} : vector<16x4xbf16> to vector<16x1xbf16>
    %27 = vector.broadcast %26 : vector<16x1xbf16> to vector<16x32xbf16>
    %28 = arith.mulf %4, %27 : vector<16x32xbf16>
    %cst_18 = arith.constant dense<0.000000e+00> : vector<32x32xf32>
    %29 = tpu.matmul %3, %28, %cst_18 {dimension_numbers = #tpu.dot_dimension_numbers<[0], [0], [1], [1], [0, 1, 1, 1], [], []>} : vector<16x32xbf16>, vector<16x32xbf16>, vector<32x32xf32> -> vector<32x32xf32>
    %c2 = arith.constant 2 : index
    %c0_19 = arith.constant 0 : index
    %c0_20 = arith.constant 0 : index
    %30 = vector.load %arg8[%c2, %c0_19, %c0_20] : memref<4x32x32xf32, #tpu.memory_space<vmem>>, vector<1x32x32xf32>
    %31 = vector.shape_cast %30 : vector<1x32x32xf32> to vector<32x32xf32>
    %32 = arith.addf %31, %29 : vector<32x32xf32>
    %c2_21 = arith.constant 2 : index
    %c0_22 = arith.constant 0 : index
    %c0_23 = arith.constant 0 : index
    %33 = vector.load %arg8[%c2_21, %c0_22, %c0_23] : memref<4x32x32xf32, #tpu.memory_space<vmem>>, vector<1x32x32xf32>
    %34 = vector.shape_cast %33 : vector<1x32x32xf32> to vector<32x32xf32>
    %35 = vector.shape_cast %32 : vector<32x32xf32> to vector<1x32x32xf32>
    tpu.vector_store %arg8[%c2_21, %c0_22, %c0_23], %35 {strides = array<i32>} : memref<4x32x32xf32, #tpu.memory_space<vmem>>, vector<1x32x32xf32>,
    %36 = vector.extract_strided_slice %5 {offsets = [0, 3], sizes = [16, 1], strides = [1, 1]} : vector<16x4xbf16> to vector<16x1xbf16>
    %37 = vector.broadcast %36 : vector<16x1xbf16> to vector<16x32xbf16>
    %38 = arith.mulf %4, %37 : vector<16x32xbf16>
    %cst_24 = arith.constant dense<0.000000e+00> : vector<32x32xf32>
    %39 = tpu.matmul %3, %38, %cst_24 {dimension_numbers = #tpu.dot_dimension_numbers<[0], [0], [1], [1], [0, 1, 1, 1], [], []>} : vector<16x32xbf16>, vector<16x32xbf16>, vector<32x32xf32> -> vector<32x32xf32>
    %c3 = arith.constant 3 : index
    %c0_25 = arith.constant 0 : index
    %c0_26 = arith.constant 0 : index
    %40 = vector.load %arg8[%c3, %c0_25, %c0_26] : memref<4x32x32xf32, #tpu.memory_space<vmem>>, vector<1x32x32xf32>
    %41 = vector.shape_cast %40 : vector<1x32x32xf32> to vector<32x32xf32>
    %42 = arith.addf %41, %39 : vector<32x32xf32>
    %c3_27 = arith.constant 3 : index
    %c0_28 = arith.constant 0 : index
    %c0_29 = arith.constant 0 : index
    %43 = vector.load %arg8[%c3_27, %c0_28, %c0_29] : memref<4x32x32xf32, #tpu.memory_space<vmem>>, vector<1x32x32xf32>
    %44 = vector.shape_cast %43 : vector<1x32x32xf32> to vector<32x32xf32>
    %45 = vector.shape_cast %42 : vector<32x32xf32> to vector<1x32x32xf32>
    tpu.vector_store %arg8[%c3_27, %c0_28, %c0_29], %45 {strides = array<i32>} : memref<4x32x32xf32, #tpu.memory_space<vmem>>, vector<1x32x32xf32>,
    return
  }
  func.func @transform_0(%arg0: i32, %arg1: i32, %arg2: memref<1xi32, #tpu.memory_space<smem>>, %arg3: memref<1xi32, #tpu.memory_space<smem>>) -> (i32, i32) {
    %0 = arith.index_cast %arg0 : i32 to index
    %1 = memref.load %arg2[%0] : memref<1xi32, #tpu.memory_space<smem>>
    %c0_i32 = arith.constant 0 : i32
    return %arg1, %1 : i32, i32
  }
  func.func @transform_1(%arg0: i32, %arg1: i32, %arg2: memref<1xi32, #tpu.memory_space<smem>>, %arg3: memref<1xi32, #tpu.memory_space<smem>>) -> (i32, i32) {
    %0 = arith.index_cast %arg0 : i32 to index
    %1 = memref.load %arg3[%0] : memref<1xi32, #tpu.memory_space<smem>>
    %c0_i32 = arith.constant 0 : i32
    return %arg1, %1 : i32, i32
  }
  func.func @transform_2(%arg0: i32, %arg1: i32, %arg2: memref<1xi32, #tpu.memory_space<smem>>, %arg3: memref<1xi32, #tpu.memory_space<smem>>) -> (i32, i32) {
    %c0_i32 = arith.constant 0 : i32
    %c0_i32_0 = arith.constant 0 : i32
    return %arg1, %c0_i32 : i32, i32
  }
  func.func @transform_3(%arg0: i32, %arg1: i32, %arg2: memref<1xi32, #tpu.memory_space<smem>>, %arg3: memref<1xi32, #tpu.memory_space<smem>>) -> (i32, i32, i32) {
    %0 = arith.index_cast %arg0 : i32 to index
    %1 = memref.load %arg2[%0] : memref<1xi32, #tpu.memory_space<smem>>
    %2 = arith.index_cast %arg0 : i32 to index
    %3 = memref.load %arg3[%2] : memref<1xi32, #tpu.memory_space<smem>>
    %c0_i32 = arith.constant 0 : i32
    %c0_i32_0 = arith.constant 0 : i32
    return %c0_i32, %1, %3 : i32, i32, i32
  }
  func.func @transform_4(%arg0: i32, %arg1: i32, %arg2: memref<1xi32, #tpu.memory_space<smem>>, %arg3: memref<1xi32, #tpu.memory_space<smem>>) -> (i32, i32, i32) {
    %0 = arith.index_cast %arg0 : i32 to index
    %1 = memref.load %arg2[%0] : memref<1xi32, #tpu.memory_space<smem>>
    %2 = arith.index_cast %arg0 : i32 to index
    %3 = memref.load %arg3[%2] : memref<1xi32, #tpu.memory_space<smem>>
    %c0_i32 = arith.constant 0 : i32
    %c0_i32_0 = arith.constant 0 : i32
    return %c0_i32, %1, %3 : i32, i32, i32
  }
}

module attributes {stable_mosaic.version = 11 : i64} {
  func.func @_linear_kernel(%arg0: i32, %arg1: i32, %arg2: i32, %arg3: memref<16x32xbf16, #tpu.memory_space<vmem>>, %arg4: memref<32x32xbf16, #tpu.memory_space<vmem>>, %arg5: memref<1x32xf32, #tpu.memory_space<vmem>>, %arg6: memref<16x32xf32, #tpu.memory_space<vmem>>) attributes {dimension_semantics = [#tpu.dimension_semantics<parallel>, #tpu.dimension_semantics<parallel>, #tpu.dimension_semantics<arbitrary>], iteration_bounds = array<i64: 1, 1, 1>, scalar_prefetch = 0 : i64, scratch_operands = 0 : i64, tpu.core_type = #tpu.core_type<tc>, window_params = [{transform_indices = @transform_0, window_bounds = array<i64: 16, 32>}, {transform_indices = @transform_1, window_bounds = array<i64: 32, 32>}, {transform_indices = @transform_2, window_bounds = array<i64: 1, 32>}, {transform_indices = @transform_3, window_bounds = array<i64: 16, 32>}]} {
    %c0_i32 = arith.constant 0 : i32
    %0 = arith.cmpi eq, %arg2, %c0_i32 : i32
    %1 = arith.extui %0 : i1 to i32
    %c0_i32_0 = arith.constant 0 : i32
    %2 = arith.cmpi ne, %1, %c0_i32_0 : i32
    scf.if %2 {
      %cst_10 = arith.constant 0.000000e+00 : f32
      %12 = vector.broadcast %cst_10 : f32 to vector<16x32xf32>
      %c0_11 = arith.constant 0 : index
      %c0_12 = arith.constant 0 : index
      %13 = vector.load %arg6[%c0_11, %c0_12] : memref<16x32xf32, #tpu.memory_space<vmem>>, vector<16x32xf32>
      tpu.vector_store %arg6[%c0_11, %c0_12], %12 {strides = array<i32>} : memref<16x32xf32, #tpu.memory_space<vmem>>, vector<16x32xf32>,
    } else {
    }
    %c0 = arith.constant 0 : index
    %c0_1 = arith.constant 0 : index
    %3 = vector.load %arg6[%c0, %c0_1] : memref<16x32xf32, #tpu.memory_space<vmem>>, vector<16x32xf32>
    %c0_2 = arith.constant 0 : index
    %c0_3 = arith.constant 0 : index
    %4 = vector.load %arg3[%c0_2, %c0_3] : memref<16x32xbf16, #tpu.memory_space<vmem>>, vector<16x32xbf16>
    %c0_4 = arith.constant 0 : index
    %c0_5 = arith.constant 0 : index
    %5 = vector.load %arg4[%c0_4, %c0_5] : memref<32x32xbf16, #tpu.memory_space<vmem>>, vector<32x32xbf16>
    %cst = arith.constant dense<0.000000e+00> : vector<16x32xf32>
    %6 = tpu.matmul %4, %5, %cst {dimension_numbers = #tpu.dot_dimension_numbers<[1], [0], [0], [1], [0, 0, 1, 1], [], []>} : vector<16x32xbf16>, vector<32x32xbf16>, vector<16x32xf32> -> vector<16x32xf32>
    %7 = arith.addf %3, %6 : vector<16x32xf32>
    %c0_6 = arith.constant 0 : index
    %c0_7 = arith.constant 0 : index
    %8 = vector.load %arg6[%c0_6, %c0_7] : memref<16x32xf32, #tpu.memory_space<vmem>>, vector<16x32xf32>
    tpu.vector_store %arg6[%c0_6, %c0_7], %7 {strides = array<i32>} : memref<16x32xf32, #tpu.memory_space<vmem>>, vector<16x32xf32>,
    %c0_i32_8 = arith.constant 0 : i32
    %9 = arith.cmpi eq, %arg2, %c0_i32_8 : i32
    %10 = arith.extui %9 : i1 to i32
    %c0_i32_9 = arith.constant 0 : i32
    %11 = arith.cmpi ne, %10, %c0_i32_9 : i32
    scf.if %11 {
      %c0_10 = arith.constant 0 : index
      %c0_11 = arith.constant 0 : index
      %12 = vector.load %arg6[%c0_10, %c0_11] : memref<16x32xf32, #tpu.memory_space<vmem>>, vector<16x32xf32>
      %c0_12 = arith.constant 0 : index
      %c0_13 = arith.constant 0 : index
      %13 = vector.load %arg5[%c0_12, %c0_13] : memref<1x32xf32, #tpu.memory_space<vmem>>, vector<1x32xf32>
      %14 = vector.broadcast %13 : vector<1x32xf32> to vector<16x32xf32>
      %15 = arith.addf %12, %14 : vector<16x32xf32>
      %c0_14 = arith.constant 0 : index
      %c0_15 = arith.constant 0 : index
      %16 = vector.load %arg6[%c0_14, %c0_15] : memref<16x32xf32, #tpu.memory_space<vmem>>, vector<16x32xf32>
      tpu.vector_store %arg6[%c0_14, %c0_15], %15 {strides = array<i32>} : memref<16x32xf32, #tpu.memory_space<vmem>>, vector<16x32xf32>,
    } else {
    }
    return
  }
  func.func @transform_0(%arg0: i32, %arg1: i32, %arg2: i32) -> (i32, i32) {
    %c0_i32 = arith.constant 0 : i32
    return %arg0, %arg2 : i32, i32
  }
  func.func @transform_1(%arg0: i32, %arg1: i32, %arg2: i32) -> (i32, i32) {
    %c0_i32 = arith.constant 0 : i32
    return %arg2, %arg1 : i32, i32
  }
  func.func @transform_2(%arg0: i32, %arg1: i32, %arg2: i32) -> (i32, i32) {
    %c0_i32 = arith.constant 0 : i32
    %c0_i32_0 = arith.constant 0 : i32
    return %c0_i32, %arg1 : i32, i32
  }
  func.func @transform_3(%arg0: i32, %arg1: i32, %arg2: i32) -> (i32, i32) {
    %c0_i32 = arith.constant 0 : i32
    return %arg0, %arg1 : i32, i32
  }
}

</mosaic_0001>

<bundles_post_ra>
// kernel: _saliency_step.2
= control target key start
LH: loop header
LB: loop body
LE: loop exit
PB: predicated region body
PF: predicated region fallthrough
CT: control target
= control target key end

     0   :  { %v496_v1 = vmov 0   ;;  %s643_s0 = inlined_call_operand.<no memory space> [shape: s32[1], index: 0, kind: input, shape index: {}, may-alias: {0,1}]   ;;  %s644_s1 = inlined_call_operand.<no memory space> [shape: s32[1], index: 1, kind: input, shape index: {}, may-alias: {0,1}]   ;;  %s645_s2 = inlined_call_operand.vmem [shape: bf16[16,32], index: 2, kind: input, shape index: {}, may-alias: {2,3}]   ;;  %s646_s3 = inlined_call_operand.vmem [shape: bf16[16,32], index: 3, kind: input, shape index: {}, may-alias: {2,3}]   ;;  %s647_s4 = inlined_call_operand.vmem [shape: bf16[16,4], index: 4, kind: input, shape index: {}]   ;;  %s648_s5 = inlined_call_operand.vmem [shape: f32[4,32,32], index: 5, kind: input, shape index: {}]   ;;  %s649_s6 = inlined_call_operand.hbm [shape: f32[4,32,32], index: 6, kind: output, shape index: {}]  }
   0x1   :  { %v137_v0 = vld [vmem:[%s647_s4] sm:$0xf]  ;;  %466 = vset.pattern.permute.xlu2 %v496_v1 }
   0x2   :  { %13 = vsyncpa [#allocation6], 0  ;;  %141 = vperm.xlu2 %466, %v137_v0   ;;  %v138_v2 = vld [vmem:[%s647_s4 + $0x4] sm:$0xf]  ;;  %v497_v3 = vmov 3   ;;  %v498_v4 = vmov 2  }
   0x3   :  { %465 = vset.pattern.permute.xlu1 %v497_v3  ;;  %464 = vset.pattern.permute.xlu0 %v498_v4  ;;  %p68_p0 = scmp.lt.s32.totalorder %s643_s0, 0  ;;  %v499_v5 = vmov 1   ;;  %p74_p1 = scmp.lt.s32.totalorder %s644_s1, 0  ;;  %v500_v7 = vmov 839922192   ;;  %vm116_vm0 = vcmask 261120  }
   0x4   :  { %332 = vperm.xlu1 %465, %v137_v0   ;;  %279 = vperm.xlu0 %464, %v137_v0   ;;  %v145_v8 = vunpack.c.l.s4 %v500_v7  ;;  %s569_s18 = sshll.u32 %s643_s0, 2  ;;  %vm186_vm1 = vcmask 130048   ;;  %s486_s11 = scalar_lea.hbm %s649_s6, 128 }
   0x5   :  { %s69_s29 = scalar_select %p68_p0, %s643_s0, 0 }
   0x6   :  { %s560_s13 = scalar_select %p74_p1, %s644_s1, 0  ;;  %v146_v10 = vunpack.c.0.s8 %v145_v8 }
   0x7   :  { %s433_s4 = sshll.u32 %s69_s29, 2  ;;  %p82_p2 = scmp.lt.s32.totalorder %s569_s18, 3 }
   0x8   :  { %s71_s8 = scalar_lea.vmem %s645_s2, %s433_s4  ;;  %s434_s14 = sshll.u32 %s560_s13, 2 }
   0x9   :  { %v451_v6 = vld [vmem:[%s71_s8] sm:$0xff]  ;;  %s77_s16 = scalar_lea.vmem %s646_s3, %s434_s14  ;;  %s391_s25 = sadd.s32 %s569_s18, %s644_s1 }
   0xa   :  { %150 = vperm.xlu2 %466, %v138_v2   ;;  %v453_v12 = vld [vmem:[%s77_s16] sm:$0xff]   ;;  %s83_s19 = scalar_select %p82_p2, %s569_s18, 3 }
   0xb   :  { %v454_v16 = vunpack.c.l.bf16 %v453_v12  ;;  %v455_v17 = vunpack.c.h.bf16 %v453_v12  ;;  %s450_s26 = sshll.u32 %s391_s25, 3  ;;  %s501_s4 = smov [#allocation5]  }
   0xc   :  { %340 = vperm.xlu1 %465, %v138_v2   ;;  %287 = vperm.xlu0 %464, %v138_v2   ;;  %s86_s20 = sadd.s32 %s83_s19, %s560_s13  ;;  %s393_s1 = scalar_lea.hbm %s649_s6, %s450_s26 }
   0xd   :  { %s436_s21 = sshll.u32 %s86_s20, 3  ;;  %s631_s29 = sshll.u32 %s393_s1, 4  ;;  %s397_s29 = int_to_ptr.hbm [resolvable:$true] %s631_s29 }
   0xe   :  { %s577_s24 = scalar_lea.vmem %s648_s5, %s436_s21  ;;  %s394_s30 = sshll.u32 %s501_s4, 4  ;;  %s395_s30 = int_to_ptr.vmem [resolvable:$true] %s394_s30 }
   0xf   :  { %v100_v49 = vld [vmem:[%s577_s24] sm:$0xff]  ;;  %v101_v55 = vld [vmem:[%s577_s24 + $0x8] sm:$0xff]  ;;  %v102_v59 = vld [vmem:[%s577_s24 + $0x10] sm:$0xff]  ;;  %s482_s7 = sshra.s32 %s397_s29, 4  ;;  %s483_s7 = int_to_ptr.hbm [resolvable:$true] %s482_s7 }
  0x10   :  { %117 = vst.msk [vmem:[#allocation5] sm:$0xff] %vm116_vm0, %v100_v49  ;;  %v104_v52 = vld [vmem:[%s577_s24 + $0x20] sm:$0xff]  ;;  %v105_v56 = vld [vmem:[%s577_s24 + $0x28] sm:$0xff]  ;;  %v106_v60 = vld [vmem:[%s577_s24 + $0x30] sm:$0xff]  ;;  %s484_s8 = scalar_lea.hbm %s483_s7, 128  ;;  %p487_p4 = scmp.lt.s32.totalorder %s483_s7, %s649_s6 }
  0x11   :  { %121 = vst.msk [vmem:[#allocation5 + $0x20] sm:$0xff] %vm116_vm0, %v104_v52  ;;  %v108_v53 = vld [vmem:[%s577_s24 + $0x40] sm:$0xff]  ;;  %v109_v57 = vld [vmem:[%s577_s24 + $0x48] sm:$0xff]  ;;  %v110_v61 = vld [vmem:[%s577_s24 + $0x50] sm:$0xff]  ;;  %p485_p3 = scmp.ne.s32.totalorder %s483_s7, %s484_s8  ;;  %p488_p5 = scmp.lt.s32.totalorder %s486_s11, %s484_s8 }
  0x12   :  { %v112_v54 = vld [vmem:[%s577_s24 + $0x60] sm:$0xff]  ;;  %125 = vst.msk [vmem:[#allocation5 + $0x40] sm:$0xff] %vm116_vm0, %v108_v53  ;;  %v113_v58 = vld [vmem:[%s577_s24 + $0x68] sm:$0xff]  ;;  %v114_v62 = vld [vmem:[%s577_s24 + $0x70] sm:$0xff] }
  0x13   :  { %129 = vst.msk [vmem:[#allocation5 + $0x60] sm:$0xff] %vm116_vm0, %v112_v54  ;;  %v103_v63 = vld [vmem:[%s577_s24 + $0x18] sm:$0xff]  ;;  %p489_p6 = por %p488_p5, %p487_p4 }
  0x14   :  { %468 = vset.pattern.permute.xlu1 %v499_v5  ;;  %467 = vset.pattern.permute.xlu0 %v499_v5  ;;  %118 = vst.msk [vmem:[#allocation5 + $0x8] sm:$0xff] %vm116_vm0, %v101_v55  ;;  %v111_v1 = vld [vmem:[%s577_s24 + $0x58] sm:$0xff] }
  0x15   :  { %234 = vperm.xlu1 %468, %v138_v2   ;;  %226 = vperm.xlu0 %467, %v137_v0   ;;  %122 = vst.msk [vmem:[#allocation5 + $0x28] sm:$0xff] %vm116_vm0, %v105_v56  ;;  %v107_v0 = vld [vmem:[%s577_s24 + $0x38] sm:$0xff]  ;;  %p490_p7 = pnand %p489_p6, %p485_p3 }
  0x16   :  { %126 = vst.msk [vmem:[#allocation5 + $0x48] sm:$0xff] %vm116_vm0, %v109_v57  ;;  %v115_v2 = vld [vmem:[%s577_s24 + $0x78] sm:$0xff] }
  0x17   :  { %130 = vst.msk [vmem:[#allocation5 + $0x68] sm:$0xff] %vm116_vm0, %v113_v58 }
  0x18   :  { %119 = vst.msk [vmem:[#allocation5 + $0x10] sm:$0xff] %vm116_vm0, %v102_v59  ;;  %v266_v4 = vld [vmem:[#allocation5 + $0x20] sm:$0xff] }
  0x19   :  { %123 = vst.msk [vmem:[#allocation5 + $0x30] sm:$0xff] %vm116_vm0, %v106_v60 }
  0x1a   :  { %127 = vst.msk [vmem:[#allocation5 + $0x50] sm:$0xff] %vm116_vm0, %v110_v61 }
  0x1b   :  { %131 = vst.msk [vmem:[#allocation5 + $0x70] sm:$0xff] %vm116_vm0, %v114_v62 }
  0x1c   :  { %120 = vst.msk [vmem:[#allocation5 + $0x18] sm:$0xff] %vm116_vm0, %v103_v63  ;;  %v267_v12 = vld [vmem:[#allocation5 + $0x28] sm:$0xff] }
  0x1d   :  { %469 = vset.pattern.permute.xlu0 %v497_v3  ;;  %124 = vst.msk [vmem:[#allocation5 + $0x38] sm:$0xff] %vm116_vm0, %v107_v0  ;;  %v212_v3 = vld [vmem:[#allocation5] sm:$0xff] }
  0x1e   :  { %128 = vst.msk [vmem:[#allocation5 + $0x58] sm:$0xff] %vm116_vm0, %v111_v1 }
  0x1f   :  { %132 = vst.msk [vmem:[#allocation5 + $0x78] sm:$0xff] %vm116_vm0, %v115_v2 }
  0x30   :  { %170 = vxpose.xlu2.c.b16.start.end [1/1] (short) (narrow) %v451_v6, 32 }
  0x5c   :  { %v142_v9 = vpop.permute.xlu2 %141 }
  0x5d   :  { %v147_v11 = vperm.slane %v142_v9, %v146_v10  ;;  %v319_v9 = vld [vmem:[#allocation5 + $0x40] sm:$0xff] }
  0x5f   :  { %v159_v14 = vunpack.c.l.bf16 %v147_v11  ;;  %v213_v11 = vld [vmem:[#allocation5 + $0x8] sm:$0xff] }
  0x61   :  { %v161_v19 = vmul.f32 %v454_v16, %v159_v14 }
  0x64   :  { %v151_v13 = vpop.permute.xlu2 %150 }
  0x65   :  { %v156_v15 = vperm.slane %v151_v13, %v146_v10 }
  0x67   :  { %v160_v18 = vunpack.c.l.bf16 %v156_v15 }
  0x69   :  { %v162_v20 = vmul.f32 %v455_v17, %v160_v18 }
  0x6b   :  { %v163_v21 = vpack.c.bf16 %v162_v20, %v161_v19 }
  0x6d   :  { %200 = vmatpush.bf16.msra.mxu0 %v163_v21  ;;  %v320_v21 = vld [vmem:[#allocation5 + $0x48] sm:$0xff] }
  0x76   :  { %v333_v22 = vpop.permute.xlu1 %332  ;;  %v280_v23 = vpop.permute.xlu0 %279 }
  0x77   :  { %v338_v24 = vperm.slane %v333_v22, %v146_v10  ;;  %v285_v25 = vperm.slane %v280_v23, %v146_v10  ;;  %v373_v22 = vld [vmem:[#allocation5 + $0x68] sm:$0xff]  ;;  %v214_v23 = vld [vmem:[#allocation5 + $0x10] sm:$0xff] }
  0x79   :  { %v347_v26 = vunpack.c.l.bf16 %v338_v24  ;;  %v294_v27 = vunpack.c.l.bf16 %v285_v25  ;;  %v268_v24 = vld [vmem:[#allocation5 + $0x30] sm:$0xff] }
  0x7b   :  { %v296_v34 = vmul.f32 %v454_v16, %v294_v27  ;;  %v349_v35 = vmul.f32 %v454_v16, %v347_v26 }
  0x7e   :  { %v341_v28 = vpop.permute.xlu1 %340  ;;  %v288_v29 = vpop.permute.xlu0 %287 }
  0x7f   :  { %v346_v30 = vperm.slane %v341_v28, %v146_v10  ;;  %v293_v31 = vperm.slane %v288_v29, %v146_v10 }
  0x81   :  { %v348_v32 = vunpack.c.l.bf16 %v346_v30  ;;  %v295_v33 = vunpack.c.l.bf16 %v293_v31 }
  0x83   :  { %v297_v36 = vmul.f32 %v455_v17, %v295_v33  ;;  %v350_v37 = vmul.f32 %v455_v17, %v348_v32  ;;  %v321_v33 = vld [vmem:[#allocation5 + $0x50] sm:$0xff] }
  0x85   :  { %v298_v38 = vpack.c.bf16 %v297_v36, %v296_v34  ;;  %v351_v39 = vpack.c.bf16 %v350_v37, %v349_v35  ;;  %v374_v34 = vld [vmem:[#allocation5 + $0x70] sm:$0xff]  ;;  %v215_v35 = vld [vmem:[#allocation5 + $0x18] sm:$0xff] }
  0x86   :  { %v269_v36 = vld [vmem:[#allocation5 + $0x38] sm:$0xff] }
  0x87   :  { %306 = vmatpush.bf16.msra.mxu2 %v298_v38  ;;  %359 = vmatpush.bf16.msra.mxu3 %v351_v39  ;;  %v235_v40 = vpop.permute.xlu1 %234  ;;  %v227_v41 = vpop.permute.xlu0 %226 }
  0x88   :  { %v240_v42 = vperm.slane %v235_v40, %v146_v10  ;;  %v232_v43 = vperm.slane %v227_v41, %v146_v10  ;;  %v372_v10 = vld [vmem:[#allocation5 + $0x60] sm:$0xff] }
  0x8a   :  { %v242_v44 = vunpack.c.l.bf16 %v240_v42  ;;  %v241_v45 = vunpack.c.l.bf16 %v232_v43 }
  0x8c   :  { %v243_v46 = vmul.f32 %v454_v16, %v241_v45  ;;  %v244_v47 = vmul.f32 %v455_v17, %v242_v44  ;;  %v322_v45 = vld [vmem:[#allocation5 + $0x58] sm:$0xff] }
  0x8e   :  { %v245_v48 = vpack.c.bf16 %v244_v47, %v243_v46  ;;  %v375_v46 = vld [vmem:[#allocation5 + $0x78] sm:$0xff] }
  0x90   :  { %253 = vmatpush.bf16.msra.mxu1 %v245_v48 }
  0xd1   :  { %v178_v50 = vpop.trf.xlu2 }
  0xd2   :  { %441 = vmatmul.msk.bf16.vlgmr.msra.gmra.mxu0 %vm186_vm1, %v178_v50  ;;  %443 = vmatmul.msk.bf16.vlgmr.msra.gmra.mxu1 %vm186_vm1, %v178_v50 }
  0xd3   :  { %445 = vmatmul.msk.bf16.vlgmr.msra.gmra.mxu2 %vm186_vm1, %v178_v50  ;;  %447 = vmatmul.msk.bf16.vlgmr.msra.gmra.mxu3 %vm186_vm1, %v178_v50 }
  0xe1   :  { %v179_v51 = vpop.trf.xlu2 }
  0xe2   :  { %442 = vmatmul.msk.bf16.gmra.mxu0 %vm186_vm1, %v179_v51  ;;  %444 = vmatmul.msk.bf16.gmra.mxu1 %vm186_vm1, %v179_v51 }
  0xe3   :  { %446 = vmatmul.msk.bf16.gmra.mxu2 %vm186_vm1, %v179_v51  ;;  %448 = vmatmul.msk.bf16.gmra.mxu3 %vm186_vm1, %v179_v51 }
 0x14f   :  { %v202_v5 = vpop.f32.mrf.mxu0  ;;  %v255_v6 = vpop.f32.mrf.mxu1 }
 0x150   :  { %v216_v7 = vadd.f32 %v212_v3, %v202_v5  ;;  %v270_v8 = vadd.f32 %v266_v4, %v255_v6 }
 0x152   :  { %221 = vst.msk [vmem:[#allocation5] sm:$0xff] %vm116_vm0, %v216_v7 }
 0x153   :  { %274 = vst.msk [vmem:[#allocation5 + $0x20] sm:$0xff] %vm116_vm0, %v270_v8 }
 0x156   :  { %v308_v13 = vpop.f32.mrf.mxu2  ;;  %v361_v14 = vpop.f32.mrf.mxu3 }
 0x157   :  { %v323_v15 = vadd.f32 %v319_v9, %v308_v13  ;;  %v376_v16 = vadd.f32 %v372_v10, %v361_v14  ;;  %v204_v17 = vpop.f32.mrf.mxu0  ;;  %v257_v18 = vpop.f32.mrf.mxu1 }
 0x158   :  { %v217_v19 = vadd.f32 %v213_v11, %v204_v17  ;;  %v271_v20 = vadd.f32 %v267_v12, %v257_v18 }
 0x159   :  { %327 = vst.msk [vmem:[#allocation5 + $0x40] sm:$0xff] %vm116_vm0, %v323_v15 }
 0x15a   :  { %380 = vst.msk [vmem:[#allocation5 + $0x60] sm:$0xff] %vm116_vm0, %v376_v16 }
 0x15b   :  { %222 = vst.msk [vmem:[#allocation5 + $0x8] sm:$0xff] %vm116_vm0, %v217_v19 }
 0x15c   :  { %275 = vst.msk [vmem:[#allocation5 + $0x28] sm:$0xff] %vm116_vm0, %v271_v20 }
 0x15e   :  { %v310_v25 = vpop.f32.mrf.mxu2  ;;  %v363_v26 = vpop.f32.mrf.mxu3 }
 0x15f   :  { %v324_v27 = vadd.f32 %v320_v21, %v310_v25  ;;  %v377_v28 = vadd.f32 %v373_v22, %v363_v26  ;;  %v207_v29 = vpop.f32.mrf.mxu0  ;;  %v260_v30 = vpop.f32.mrf.mxu1 }
 0x160   :  { %v218_v31 = vadd.f32 %v214_v23, %v207_v29  ;;  %v272_v32 = vadd.f32 %v268_v24, %v260_v30 }
 0x161   :  { %328 = vst.msk [vmem:[#allocation5 + $0x48] sm:$0xff] %vm116_vm0, %v324_v27 }
 0x162   :  { %381 = vst.msk [vmem:[#allocation5 + $0x68] sm:$0xff] %vm116_vm0, %v377_v28 }
 0x163   :  { %223 = vst.msk [vmem:[#allocation5 + $0x10] sm:$0xff] %vm116_vm0, %v218_v31 }
 0x164   :  { %276 = vst.msk [vmem:[#allocation5 + $0x30] sm:$0xff] %vm116_vm0, %v272_v32 }
 0x166   :  { %v313_v37 = vpop.f32.mrf.mxu2  ;;  %v366_v38 = vpop.f32.mrf.mxu3 }
 0x167   :  { %v325_v39 = vadd.f32 %v321_v33, %v313_v37  ;;  %v378_v40 = vadd.f32 %v374_v34, %v366_v38  ;;  %v209_v41 = vpop.f32.mrf.mxu0  ;;  %v262_v42 = vpop.f32.mrf.mxu1 }
 0x168   :  { %v219_v43 = vadd.f32 %v215_v35, %v209_v41  ;;  %v273_v44 = vadd.f32 %v269_v36, %v262_v42 }
 0x169   :  { %329 = vst.msk [vmem:[#allocation5 + $0x50] sm:$0xff] %vm116_vm0, %v325_v39 }
 0x16a   :  { %382 = vst.msk [vmem:[#allocation5 + $0x70] sm:$0xff] %vm116_vm0, %v378_v40 }
 0x16b   :  { %224 = vst.msk [vmem:[#allocation5 + $0x18] sm:$0xff] %vm116_vm0, %v219_v43 }
 0x16c   :  { %277 = vst.msk [vmem:[#allocation5 + $0x38] sm:$0xff] %vm116_vm0, %v273_v44 }
 0x16e   :  { %v315_v47 = vpop.f32.mrf.mxu2  ;;  %v368_v48 = vpop.f32.mrf.mxu3 }
 0x16f   :  { %v326_v49 = vadd.f32 %v322_v45, %v315_v47  ;;  %v379_v50 = vadd.f32 %v375_v46, %v368_v48 }
 0x171   :  { %330 = vst.msk [vmem:[#allocation5 + $0x58] sm:$0xff] %vm116_vm0, %v326_v49 }
 0x172   :  { %383 = vst.msk [vmem:[#allocation5 + $0x78] sm:$0xff] %vm116_vm0, %v379_v50 }
 0x173   :  { %493 = shalt.err (!%p490_p7)
}
 0x174   :  { %s502_s14 = smov 128   ;;  %s503_s15 = smov 8  }
 0x175   :  { %402 = dma.vmem_to_hbm [thread:$0]  %s395_s30, 2048, %s397_s29, [#allocation6], %s502_s14, %s502_s14, %s503_s15  }
 0x176   :  { %494 = dma.done.wait [#allocation6], 2048  }
 0x177   :  { %495 = vsyncadd [#allocation6], 4294965248 }
 0x178   :  { %407 = vsyncpa [#allocation6], 1 }

// kernel: _saliency_step.3
= control target key start
LH: loop header
LB: loop body
LE: loop exit
PB: predicated region body
PF: predicated region fallthrough
CT: control target
= control target key end

     0   :  { %vm20_vm0 = vcmask 261120   ;;  %v148_v1 = vmov 0.0   ;;  %s194_s0 = inlined_call_operand.vmem [shape: bf16[16,32], index: 0, kind: input, shape index: {}]   ;;  %s195_s1 = inlined_call_operand.vmem [shape: bf16[32,32], index: 1, kind: input, shape index: {}]   ;;  %s196_s2 = inlined_call_operand.vmem [shape: f32[1,32], index: 2, kind: input, shape index: {}]   ;;  %s197_s3 = inlined_call_operand.hbm [shape: f32[16,32], index: 3, kind: output, shape index: {}]  }
   0x1   :  { %v116_v0 = vld [vmem:[%s195_s1 + $0x8] sm:$0xff]  ;;  %21 = vst.msk [vmem:[#allocation2] sm:$0xff] %vm20_vm0, %v148_v1 }
   0x2   :  { %8 = vsyncpa [#allocation3], 0  ;;  %58 = vmatpush.bf16.msra.mxu0 %v116_v0  ;;  %v115_v2 = vld [vmem:[%s195_s1] sm:$0xff]  ;;  %22 = vst.msk [vmem:[#allocation2 + $0x8] sm:$0xff] %vm20_vm0, %v148_v1  ;;  %s89_s22 = sshll.u32 %s197_s3, 4  ;;  %s151_s23 = smov 8   ;;  %s90_s22 = int_to_ptr.hbm [resolvable:$true] %s89_s22 }
   0x3   :  { %v114_v3 = vld [vmem:[%s194_s0] sm:$0xff]  ;;  %s149_s0 = smov [#allocation2]  }
   0x4   :  { %v121_v8 = vld [vmem:[%s196_s2] ss:$0 sm:$0xff]  ;;  %s87_s1 = sshll.u32 %s149_s0, 4  ;;  %s150_s2 = smov 128   ;;  %s88_s1 = int_to_ptr.vmem [resolvable:$true] %s87_s1 }
   0x6   :  { %59 = vmatpush.bf16.msra.mxu0 %v115_v2 }
   0x8   :  { %v23_v4 = vld [vmem:[#allocation2] sm:$0xff] }
   0x9   :  { %113 = vmatmul.msk.bf16.vlgmr.msra.gmra.mxu0 %vm20_vm0, %v114_v3  ;;  %v24_v7 = vld [vmem:[#allocation2 + $0x8] sm:$0xff] }
  0x86   :  { %v61_v5 = vpop.f32.mrf.mxu0 }
  0x87   :  { %v66_v6 = vadd.f32 %v61_v5, %v23_v4 }
  0x89   :  { %68 = vst.msk [vmem:[#allocation2] sm:$0xff] %vm20_vm0, %v66_v6 }
  0x8e   :  { %v63_v9 = vpop.f32.mrf.mxu0 }
  0x8f   :  { %v67_v10 = vadd.f32 %v63_v9, %v24_v7 }
  0x90   :  { %v73_v11 = vld [vmem:[#allocation2] sm:$0xff] }
  0x91   :  { %v79_v12 = vadd.f32 %v121_v8, %v73_v11  ;;  %69 = vst.msk [vmem:[#allocation2 + $0x8] sm:$0xff] %vm20_vm0, %v67_v10 }
  0x93   :  { %81 = vst.msk [vmem:[#allocation2] sm:$0xff] %vm20_vm0, %v79_v12 }
  0x98   :  { %v74_v13 = vld [vmem:[#allocation2 + $0x8] sm:$0xff] }
  0x99   :  { %v80_v14 = vadd.f32 %v121_v8, %v74_v13 }
  0x9b   :  { %82 = vst.msk [vmem:[#allocation2 + $0x8] sm:$0xff] %vm20_vm0, %v80_v14 }
  0x9c   :  { %95 = dma.vmem_to_hbm [thread:$0]  %s88_s1, 256, %s90_s22, [#allocation3], %s150_s2, %s150_s2, %s151_s23  }
  0x9d   :  { %146 = dma.done.wait [#allocation3], 256  }
  0x9e   :  { %147 = vsyncadd [#allocation3], 4294967040 }
  0x9f   :  { %100 = vsyncpa [#allocation3], 1 }

</bundles_post_ra>
